<compile_context>
chip_gen: v7x
topology: tpu7x:2x2x1
jax: 0.10.0
libtpu: 0.0.40
codegen_flags: <defaults>
</compile_context>

<pallas_src>
import jax
import jax.numpy as jnp
from jax.experimental import pallas as pl
from jax.experimental.pallas import tpu as pltpu


# ----------------------------- helpers ---------------------------------------


def _round_up(v, m):
    return (v + m - 1) // m * m


def _vmem_capacity_bytes():
    try:
        return int(pltpu.get_tpu_info().vmem_capacity_bytes)
    except Exception:
        return 64 * 1024 * 1024  # conservative (v7x-sized) fallback


def _build_a_hat(edge_index, n, n_pad):
    """A_hat = A + (1+eps)*I, eps=0; single fused scatter-add directly into bf16."""
    diag = jnp.arange(n, dtype=jnp.int32)
    dst = jnp.concatenate([edge_index[1].astype(jnp.int32), diag])
    src = jnp.concatenate([edge_index[0].astype(jnp.int32), diag])
    ones = jnp.ones(dst.shape, dtype=jnp.bfloat16)
    return jnp.zeros((n_pad, n_pad), dtype=jnp.bfloat16).at[dst, src].add(ones)


# ----------------------------- kernels ----------------------------------------


def gin_fused_kernel(a_ref, x_ref, w1_ref, b1_ref, w2_ref, b2_ref, out_ref):
    """Both GIN layers fused; A_hat read from HBM exactly once.

    a_ref : [N, N]    bf16   A_hat (self-term folded in)
    x_ref : [N, F_in] bf16
    w1_ref: [F_in, H] bf16   (transposed vs torch Linear weight)
    b1_ref: [1, H]    f32
    w2_ref: [H, C]    bf16
    b2_ref: [1, C]    f32
    out   : [N, C]    f32    log_softmax outputs
    """
    agg1 = jnp.dot(a_ref[...], x_ref[...], preferred_element_type=jnp.float32)
    h1 = jnp.maximum(
        jnp.dot(agg1.astype(jnp.bfloat16), w1_ref[...],
                preferred_element_type=jnp.float32) + b1_ref[...],
        0.0)
    # dropout(p=0.5, training=False) -> identity
    # Aggregate-after-project reorder: project to classes before the 2nd aggregation.
    q = jnp.dot(h1.astype(jnp.bfloat16), w2_ref[...],
                preferred_element_type=jnp.float32)
    z = jnp.dot(a_ref[...], q.astype(jnp.bfloat16),
                preferred_element_type=jnp.float32) + b2_ref[...]
    z_max = jnp.max(z, axis=1, keepdims=True)
    z_shift = z - z_max
    out_ref[...] = z_shift - jnp.log(jnp.sum(jnp.exp(z_shift), axis=1, keepdims=True))


def gin_layer1_kernel(a_ref, x_ref, w1_ref, b1_ref, w2_ref, q_ref, acc_ref):
    """Row/K-tiled layer 1, fused with the layer-2 class projection.

    a_ref : [TM, TK]   bf16  A_hat tile
    x_ref : [TK, F_in] bf16
    acc   : [TM, F_in] f32   scratch accumulator over K
    q_ref : [TM, C]    bf16  q = relu(A_hat@x @ W1 + b1) @ W2
    """
    k = pl.program_id(1)

    @pl.when(k == 0)
    def _():
        acc_ref[...] = jnp.zeros_like(acc_ref)

    acc_ref[...] += jnp.dot(a_ref[...], x_ref[...],
                            preferred_element_type=jnp.float32)

    @pl.when(k == pl.num_programs(1) - 1)
    def _():
        h1 = jnp.maximum(
            jnp.dot(acc_ref[...].astype(jnp.bfloat16), w1_ref[...],
                    preferred_element_type=jnp.float32) + b1_ref[...],
            0.0)
        # dropout(p=0.5, training=False) -> identity
        q_ref[...] = jnp.dot(h1.astype(jnp.bfloat16), w2_ref[...],
                             preferred_element_type=jnp.float32).astype(q_ref.dtype)


def gin_layer2_kernel(a_ref, q_ref, b2_ref, out_ref, acc_ref):
    """Row/K-tiled layer 2: aggregate projected logits, add bias, log_softmax."""
    k = pl.program_id(1)

    @pl.when(k == 0)
    def _():
        acc_ref[...] = jnp.zeros_like(acc_ref)

    acc_ref[...] += jnp.dot(a_ref[...], q_ref[...],
                            preferred_element_type=jnp.float32)

    @pl.when(k == pl.num_programs(1) - 1)
    def _():
        z = acc_ref[...] + b2_ref[...]
        z_max = jnp.max(z, axis=1, keepdims=True)
        z_shift = z - z_max
        out_ref[...] = z_shift - jnp.log(
            jnp.sum(jnp.exp(z_shift), axis=1, keepdims=True))


# ----------------------------- wrapper ----------------------------------------


def gin_forward(x, edge_index, w1, b1, w2, b2, *,
                tile_m=None, tile_k=None, force_tiled=False):
    """GIN forward.  Picks a single fused kernel when A_hat fits in VMEM, else a
    row/K-tiled two-kernel pipeline with bounded VMEM."""
    n, f_in = x.shape
    h = w1.shape[1]
    c = w2.shape[1]

    vmem_cap = _vmem_capacity_bytes()

    w1_bf = w1.astype(jnp.bfloat16)
    w2_bf = w2.astype(jnp.bfloat16)
    b1r = b1.reshape(1, -1).astype(jnp.float32)
    b2r = b2.reshape(1, -1).astype(jnp.float32)

    # Fused-path footprint estimate (conservative: assume A_hat is double-buffered).
    n_fused = _round_up(n, 8)
    fused_bytes = (
        2 * n_fused * n_fused * 2
        + n_fused * (f_in * 6 + h * 6 + c * 16)
        + (f_in * h + h * c) * 2 + (h + c) * 4
    )
    use_fused = (not force_tiled) and fused_bytes <= vmem_cap // 2

    if use_fused:
        # ---- Single fused kernel: A_hat read from HBM once. ----
        n_pad = n_fused
        adj = _build_a_hat(edge_index, n, n_pad)
        x_p = jnp.pad(x.astype(jnp.bfloat16), ((0, n_pad - n), (0, 0)))
        vmem_limit = int(min(0.8 * vmem_cap,
                             max(32 * 1024 * 1024, 2 * fused_bytes)))

        out = pl.pallas_call(
            gin_fused_kernel,
            out_shape=jax.ShapeDtypeStruct((n_pad, c), jnp.float32),
            grid=(1,),
            in_specs=[
                pl.BlockSpec((n_pad, n_pad), lambda i: (0, 0)),   # A_hat
                pl.BlockSpec((n_pad, f_in), lambda i: (0, 0)),    # x
                pl.BlockSpec((f_in, h), lambda i: (0, 0)),        # W1
                pl.BlockSpec((1, h), lambda i: (0, 0)),           # b1
                pl.BlockSpec((h, c), lambda i: (0, 0)),           # W2
                pl.BlockSpec((1, c), lambda i: (0, 0)),           # b2
            ],
            out_specs=pl.BlockSpec((n_pad, c), lambda i: (0, 0)),
            compiler_params=pltpu.CompilerParams(
                dimension_semantics=("arbitrary",),
                vmem_limit_bytes=vmem_limit,
            ),
        )(adj, x_p, w1_bf, b1r, w2_bf, b2r)
        return out[:n]

    # ---- Tiled path: rows x K reduction grid; VMEM bounded independent of N. ----
    if tile_k is None:
        tile_k = 2048
    if tile_m is None:
        # 128 MiB parts (v5e/v6e): bigger row tiles; 64 MiB parts (v7x): 256.
        tile_m = 512 if vmem_cap >= 96 * 1024 * 1024 else 256

    # tk: power-of-two multiple of 128 so tm | tk | n_pad always holds.
    tk = min(int(tile_k), max(128, pl.next_power_of_2(n)))
    n_pad = _round_up(n, tk)
    tm = min(int(tile_m), tk)
    grid = (n_pad // tm, n_pad // tk)

    adj = _build_a_hat(edge_index, n, n_pad)
    x_p = jnp.pad(x.astype(jnp.bfloat16), ((0, n_pad - n), (0, 0)))

    cparams = pltpu.CompilerParams(
        dimension_semantics=("parallel", "arbitrary"),
        vmem_limit_bytes=int(0.8 * vmem_cap),
    )

    # Layer 1 (+ fused class projection): q = relu(A_hat@x @ W1 + b1) @ W2
    q = pl.pallas_call(
        gin_layer1_kernel,
        out_shape=jax.ShapeDtypeStruct((n_pad, c), jnp.bfloat16),
        grid=grid,
        in_specs=[
            pl.BlockSpec((tm, tk), lambda i, k: (i, k)),       # A_hat tile
            pl.BlockSpec((tk, f_in), lambda i, k: (k, 0)),     # x K-slab
            pl.BlockSpec((f_in, h), lambda i, k: (0, 0)),      # W1 resident
            pl.BlockSpec((1, h), lambda i, k: (0, 0)),         # b1
            pl.BlockSpec((h, c), lambda i, k: (0, 0)),         # W2 resident
        ],
        out_specs=pl.BlockSpec((tm, c), lambda i, k: (i, 0)),
        scratch_shapes=[pltpu.VMEM((tm, f_in), jnp.float32)],
        compiler_params=cparams,
    )(adj, x_p, w1_bf, b1r, w2_bf)

    # Layer 2: z = A_hat @ q + b2 ; out = log_softmax(z)
    out = pl.pallas_call(
        gin_layer2_kernel,
        out_shape=jax.ShapeDtypeStruct((n_pad, c), jnp.float32),
        grid=grid,
        in_specs=[
            pl.BlockSpec((tm, tk), lambda i, k: (i, k)),       # A_hat tile
            pl.BlockSpec((tk, c), lambda i, k: (k, 0)),        # q K-slab
            pl.BlockSpec((1, c), lambda i, k: (0, 0)),         # b2
        ],
        out_specs=pl.BlockSpec((tm, c), lambda i, k: (i, 0)),
        scratch_shapes=[pltpu.VMEM((tm, c), jnp.float32)],
        compiler_params=cparams,
    )(adj, q, b2r)

    return out[:n]


# ----------------------------- reference & test --------------------------------


def gin_reference(x, edge_index, w1, b1, w2, b2):
    """Pure-JAX f32 reference mirroring the torch module's eval-mode forward."""
    n = x.shape[0]
    src, dst = edge_index[0], edge_index[1]
    adj = jnp.zeros((n, n), dtype=jnp.float32).at[dst, src].add(1.0)
    agg1 = adj @ x + x
    h1 = jnp.maximum(agg1 @ w1 + b1, 0.0)
    agg2 = adj @ h1 + h1
    z = agg2 @ w2 + b2
    return jax.nn.log_softmax(z, axis=1)


def _linear_init(key, fan_in, fan_out):
    """torch.nn.Linear default init: U(-1/sqrt(fan_in), 1/sqrt(fan_in))."""
    kw, kb = jax.random.split(key)
    bound = 1.0 / (fan_in ** 0.5)
    # Stored already transposed: [fan_in, fan_out] so kernels do X @ W.
    w = jax.random.uniform(kw, (fan_in, fan_out), jnp.float32, -bound, bound)
    b = jax.random.uniform(kb, (fan_out,), jnp.float32, -bound, bound)
    return w, b


if __name__ == "__main__":
    # Small synthetic shapes consistent with the module's forward.
    N_NODES = 32   # number of nodes in the (mini-batch) graph
    DIM_IN = 16    # input feature dim
    DIM_H = 32     # hidden dim
    DIM_OUT = 8    # number of classes

    key = jax.random.PRNGKey(0)
    kx, ke, k1, k2 = jax.random.split(key, 4)

    # Node features.
    x = jax.random.normal(kx, (N_NODES, DIM_IN), dtype=jnp.float32)

    # Deterministic edge_index [2, E]: a ring plus some random directed edges.
    ring_src = jnp.arange(N_NODES, dtype=jnp.int32)
    ring_dst = (ring_src + 1) % N_NODES
    n_rand = 64
    rand_src = jax.random.randint(ke, (n_rand,), 0, N_NODES, dtype=jnp.int32)
    rand_dst = jax.random.randint(
        jax.random.fold_in(ke, 1), (n_rand,), 0, N_NODES, dtype=jnp.int32
    )
    edge_index = jnp.stack(
        [jnp.concatenate([ring_src, rand_src]),
         jnp.concatenate([ring_dst, rand_dst])],
        axis=0,
    )

    # Deterministic parameters (GINConv(Linear(dim_in, dim_h)), GINConv(Linear(dim_h, dim_out))).
    w1, b1 = _linear_init(k1, DIM_IN, DIM_H)
    w2, b2 = _linear_init(k2, DIM_H, DIM_OUT)

    ref = gin_reference(x, edge_index, w1, b1, w2, b2)

    # Path 1: fused single-kernel (default for small graphs).
    out_fused = jax.block_until_ready(gin_forward(x, edge_index, w1, b1, w2, b2))
    # Path 2: row/K-tiled two-kernel pipeline (large-graph path, exercised here too).
    out_tiled = jax.block_until_ready(
        gin_forward(x, edge_index, w1, b1, w2, b2, force_tiled=True))

    for out in (out_fused, out_tiled):
        assert out.shape == (N_NODES, DIM_OUT)
        # Sanity 1: log_softmax rows must sum (in prob space) to 1.
        row_sums = jnp.exp(out).sum(axis=1)
        assert bool(jnp.all(jnp.abs(row_sums - 1.0) < 1e-3))
        # Sanity 2: match the pure-f32 reference (loose tolerance for the bf16 path).
        max_diff = float(jnp.max(jnp.abs(out - ref)))
        assert max_diff < 0.2, f"max diff vs f32 reference too large: {max_diff}"

    print("KERNEL_OK")
</pallas_src>

<mosaic_0001>
module attributes {stable_mosaic.version = 11 : i64} {
  func.func @gin_fused_kernel(%arg0: i32, %arg1: memref<32x32xbf16, #tpu.memory_space<vmem>>, %arg2: memref<32x16xbf16, #tpu.memory_space<vmem>>, %arg3: memref<16x32xbf16, #tpu.memory_space<vmem>>, %arg4: memref<1x32xf32, #tpu.memory_space<vmem>>, %arg5: memref<32x8xbf16, #tpu.memory_space<vmem>>, %arg6: memref<1x8xf32, #tpu.memory_space<vmem>>, %arg7: memref<32x8xf32, #tpu.memory_space<vmem>>) attributes {dimension_semantics = [#tpu.dimension_semantics<arbitrary>], iteration_bounds = array<i64: 1>, scalar_prefetch = 0 : i64, scratch_operands = 0 : i64, tpu.core_type = #tpu.core_type<tc>, window_params = [{pipeline_mode = #tpu.pipeline_mode<synchronous>, transform_indices = @transform_0, window_bounds = array<i64: 32, 32>}, {pipeline_mode = #tpu.pipeline_mode<synchronous>, transform_indices = @transform_1, window_bounds = array<i64: 32, 16>}, {pipeline_mode = #tpu.pipeline_mode<synchronous>, transform_indices = @transform_2, window_bounds = array<i64: 16, 32>}, {pipeline_mode = #tpu.pipeline_mode<synchronous>, transform_indices = @transform_3, window_bounds = array<i64: 1, 32>}, {pipeline_mode = #tpu.pipeline_mode<synchronous>, transform_indices = @transform_4, window_bounds = array<i64: 32, 8>}, {pipeline_mode = #tpu.pipeline_mode<synchronous>, transform_indices = @transform_5, window_bounds = array<i64: 1, 8>}, {pipeline_mode = #tpu.pipeline_mode<synchronous>, transform_indices = @transform_6, window_bounds = array<i64: 32, 8>}]} {
    %c0 = arith.constant 0 : index
    %c0_0 = arith.constant 0 : index
    %0 = vector.load %arg1[%c0, %c0_0] : memref<32x32xbf16, #tpu.memory_space<vmem>>, vector<32x32xbf16>
    %c0_1 = arith.constant 0 : index
    %c0_2 = arith.constant 0 : index
    %1 = vector.load %arg2[%c0_1, %c0_2] : memref<32x16xbf16, #tpu.memory_space<vmem>>, vector<32x16xbf16>
    %cst = arith.constant dense<0.000000e+00> : vector<32x16xf32>
    %2 = tpu.matmul %0, %1, %cst {dimension_numbers = #tpu.dot_dimension_numbers<[1], [0], [0], [1], [0, 0, 1, 1], [], []>} : vector<32x32xbf16>, vector<32x16xbf16>, vector<32x16xf32> -> vector<32x16xf32>
    %3 = arith.truncf %2 : vector<32x16xf32> to vector<32x16xbf16>
    %c0_3 = arith.constant 0 : index
    %c0_4 = arith.constant 0 : index
    %4 = vector.load %arg3[%c0_3, %c0_4] : memref<16x32xbf16, #tpu.memory_space<vmem>>, vector<16x32xbf16>
    %cst_5 = arith.constant dense<0.000000e+00> : vector<32x32xf32>
    %5 = tpu.matmul %3, %4, %cst_5 {dimension_numbers = #tpu.dot_dimension_numbers<[1], [0], [0], [1], [0, 0, 1, 1], [], []>} : vector<32x16xbf16>, vector<16x32xbf16>, vector<32x32xf32> -> vector<32x32xf32>
    %c0_6 = arith.constant 0 : index
    %c0_7 = arith.constant 0 : index
    %6 = vector.load %arg4[%c0_6, %c0_7] : memref<1x32xf32, #tpu.memory_space<vmem>>, vector<1x32xf32>
    %7 = vector.broadcast %6 : vector<1x32xf32> to vector<32x32xf32>
    %8 = arith.addf %5, %7 : vector<32x32xf32>
    %cst_8 = arith.constant 0.000000e+00 : f32
    %9 = vector.broadcast %cst_8 : f32 to vector<32x32xf32>
    %10 = arith.maximumf %8, %9 : vector<32x32xf32>
    %11 = arith.truncf %10 : vector<32x32xf32> to vector<32x32xbf16>
    %c0_9 = arith.constant 0 : index
    %c0_10 = arith.constant 0 : index
    %12 = vector.load %arg5[%c0_9, %c0_10] : memref<32x8xbf16, #tpu.memory_space<vmem>>, vector<32x8xbf16>
    %cst_11 = arith.constant dense<0.000000e+00> : vector<32x8xf32>
    %13 = tpu.matmul %11, %12, %cst_11 {dimension_numbers = #tpu.dot_dimension_numbers<[1], [0], [0], [1], [0, 0, 1, 1], [], []>} : vector<32x32xbf16>, vector<32x8xbf16>, vector<32x8xf32> -> vector<32x8xf32>
    %c0_12 = arith.constant 0 : index
    %c0_13 = arith.constant 0 : index
    %14 = vector.load %arg1[%c0_12, %c0_13] : memref<32x32xbf16, #tpu.memory_space<vmem>>, vector<32x32xbf16>
    %15 = arith.truncf %13 : vector<32x8xf32> to vector<32x8xbf16>
    %cst_14 = arith.constant dense<0.000000e+00> : vector<32x8xf32>
    %16 = tpu.matmul %14, %15, %cst_14 {dimension_numbers = #tpu.dot_dimension_numbers<[1], [0], [0], [1], [0, 0, 1, 1], [], []>} : vector<32x32xbf16>, vector<32x8xbf16>, vector<32x8xf32> -> vector<32x8xf32>
    %c0_15 = arith.constant 0 : index
    %c0_16 = arith.constant 0 : index
    %17 = vector.load %arg6[%c0_15, %c0_16] : memref<1x8xf32, #tpu.memory_space<vmem>>, vector<1x8xf32>
    %18 = vector.broadcast %17 : vector<1x8xf32> to vector<32x8xf32>
    %19 = arith.addf %16, %18 : vector<32x8xf32>
    %cst_17 = arith.constant dense<0xFF800000> : vector<32xf32>
    %20 = vector.multi_reduction <maximumf>, %19, %cst_17 [1] : vector<32x8xf32> to vector<32xf32>
    %21 = vector.shape_cast %20 : vector<32xf32> to vector<32x1xf32>
    %22 = vector.broadcast %21 : vector<32x1xf32> to vector<32x8xf32>
    %23 = arith.subf %19, %22 : vector<32x8xf32>
    %24 = math.exp %23 : vector<32x8xf32>
    %cst_18 = arith.constant dense<0.000000e+00> : vector<32xf32>
    %25 = vector.multi_reduction <add>, %24, %cst_18 [1] : vector<32x8xf32> to vector<32xf32>
    %26 = vector.shape_cast %25 : vector<32xf32> to vector<32x1xf32>
    %27 = math.log %26 : vector<32x1xf32>
    %28 = vector.broadcast %27 : vector<32x1xf32> to vector<32x8xf32>
    %29 = arith.subf %23, %28 : vector<32x8xf32>
    %c0_19 = arith.constant 0 : index
    %c0_20 = arith.constant 0 : index
    %30 = vector.load %arg7[%c0_19, %c0_20] : memref<32x8xf32, #tpu.memory_space<vmem>>, vector<32x8xf32>
    tpu.vector_store %arg7[%c0_19, %c0_20], %29 {strides = array<i32>} : memref<32x8xf32, #tpu.memory_space<vmem>>, vector<32x8xf32>,
    return
  }
  func.func @transform_0(%arg0: i32) -> (i32, i32) {
    %c0_i32 = arith.constant 0 : i32
    %c0_i32_0 = arith.constant 0 : i32
    %c0_i32_1 = arith.constant 0 : i32
    return %c0_i32, %c0_i32_0 : i32, i32
  }
  func.func @transform_1(%arg0: i32) -> (i32, i32) {
    %c0_i32 = arith.constant 0 : i32
    %c0_i32_0 = arith.constant 0 : i32
    %c0_i32_1 = arith.constant 0 : i32
    return %c0_i32, %c0_i32_0 : i32, i32
  }
  func.func @transform_2(%arg0: i32) -> (i32, i32) {
    %c0_i32 = arith.constant 0 : i32
    %c0_i32_0 = arith.constant 0 : i32
    %c0_i32_1 = arith.constant 0 : i32
    return %c0_i32, %c0_i32_0 : i32, i32
  }
  func.func @transform_3(%arg0: i32) -> (i32, i32) {
    %c0_i32 = arith.constant 0 : i32
    %c0_i32_0 = arith.constant 0 : i32
    %c0_i32_1 = arith.constant 0 : i32
    return %c0_i32, %c0_i32_0 : i32, i32
  }
  func.func @transform_4(%arg0: i32) -> (i32, i32) {
    %c0_i32 = arith.constant 0 : i32
    %c0_i32_0 = arith.constant 0 : i32
    %c0_i32_1 = arith.constant 0 : i32
    return %c0_i32, %c0_i32_0 : i32, i32
  }
  func.func @transform_5(%arg0: i32) -> (i32, i32) {
    %c0_i32 = arith.constant 0 : i32
    %c0_i32_0 = arith.constant 0 : i32
    %c0_i32_1 = arith.constant 0 : i32
    return %c0_i32, %c0_i32_0 : i32, i32
  }
  func.func @transform_6(%arg0: i32) -> (i32, i32) {
    %c0_i32 = arith.constant 0 : i32
    %c0_i32_0 = arith.constant 0 : i32
    %c0_i32_1 = arith.constant 0 : i32
    return %c0_i32, %c0_i32_0 : i32, i32
  }
}

</mosaic_0001>

<bundles_post_ra>
// kernel: tpu_custom_call.1
= control target key start
LH: loop header
LB: loop body
LE: loop exit
PB: predicated region body
PF: predicated region fallthrough
CT: control target
= control target key end

     0   :  { %vm54_vm0 = vcmask 261120   ;;  %vm127_vm1 = vcmask 130048   ;;  %vm318_vm2 = vcmask 64512   ;;  %s552_s1 = inlined_call_operand.vmem [shape: bf16[32,16], index: 1, kind: input, shape index: {}]   ;;  %s553_s0 = inlined_call_operand.vmem [shape: bf16[32,32], index: 0, kind: input, shape index: {}]   ;;  %s554_s2 = inlined_call_operand.vmem [shape: bf16[16,32], index: 2, kind: input, shape index: {}]   ;;  %s555_s4 = inlined_call_operand.vmem [shape: bf16[32,8], index: 4, kind: input, shape index: {}]   ;;  %s556_s3 = inlined_call_operand.vmem [shape: f32[1,32], index: 3, kind: input, shape index: {}]   ;;  %s557_s5 = inlined_call_operand.vmem [shape: f32[1,8], index: 5, kind: input, shape index: {}]   ;;  %s558_s6 = inlined_call_operand.vmem [shape: f32[32,8], index: 6, kind: output, shape index: {}]  }
   0x1   :  { %v437_v0 = vld [vmem:[%s552_s1] sm:$0xff]   ;;  %v438_v1 = vld [vmem:[%s552_s1 + $0x8] sm:$0xff]  }
   0x2   :  { %407 = vmatprep.subr.bf16.mxu0 %v437_v0  ;;  %v439_v2 = vld [vmem:[%s553_s0] sm:$0xff]   ;;  %v440_v3 = vld [vmem:[%s553_s0 + $0x8] sm:$0xff]  }
   0x3   :  { %408 = vmatpush3.bf16.msra.mxu0 %v437_v0  ;;  %411 = vmatprep.mubr.msk.bf16.mxu0 %vm54_vm0, %v439_v2  ;;  %v441_v4 = vld [vmem:[%s554_s2] sm:$0xff]   ;;  %v443_v12 = vld [vmem:[%s555_s4 + $0x8] sm:$0xff]  }
   0x4   :  { %409 = vmatprep.subr.bf16.mxu0 %v438_v1  ;;  %415 = vmatprep.subr.bf16.mxu1 %v441_v4  ;;  %v442_v11 = vld [vmem:[%s555_s4] sm:$0xff]  }
   0x5   :  { %416 = vmatpush3.bf16.msra.mxu1 %v441_v4  ;;  %v381_v13 = vld [vmem:[%s556_s3] ss:$0 sm:$0xff] }
   0x6   :  { %421 = vmatprep.subr.bf16.mxu1 %v442_v11  ;;  %v389_v34 = vld [vmem:[%s557_s5] ss:$0 sm:$0xff] }
   0x7   :  { %410 = vmatpush3.bf16.msra.mxu0 %v438_v1 }
   0xa   :  { %412 = vmatmul.mubr.msk.bf16.vlgmr.msra.gmra.mrb[0].mxu0 %vm54_vm0, %v440_v3 }
   0xb   :  { %433 = vmatprep.mubr.msk.bf16.mxu0 %vm54_vm0, %v439_v2 }
  0xdd   :  { %v413_v5 = vpop.f32.mrb[0].mxu0 }
  0xde   :  { %v95_v6 = vpop.f32.mrb[1].mxu0 }
  0xdf   :  { %v414_v7 = vpop.f32.mrb[2].mxu0 }
  0xe0   :  { %v111_v8 = vpack.c.bf16 %v414_v7, %v413_v5  ;;  %v98_v9 = vpop.f32.mrb[3].mxu0 }
  0xe1   :  { %v110_v10 = vpack.c.bf16 %v98_v9, %v95_v6 }
  0xe3   :  { %417 = vmatprep.mubr.msk.bf16.mxu1 %vm127_vm1, %v110_v10 }
  0xe4   :  { %418 = vmatmul.mubr.msk.bf16.vlgmr.msra.gmra.mrb[0].mxu1 %vm127_vm1, %v111_v8 }
  0xe5   :  { %422 = vmatpush3.bf16.msra.mxu1 %v442_v11 }
  0xe6   :  { %423 = vmatprep.subr.bf16.mxu1 %v443_v12 }
  0xe9   :  { %424 = vmatpush3.bf16.msra.mxu1 %v443_v12 }
 0x1b7   :  { %v419_v14 = vpop.f32.mrb[0].mxu1 }
 0x1b8   :  { %v177_v15 = vadd.f32 %v419_v14, %v381_v13  ;;  %v168_v16 = vpop.f32.mrb[1].mxu1 }
 0x1b9   :  { %v169_v17 = vadd.f32 %v381_v13, %v168_v16  ;;  %v420_v18 = vpop.f32.mrb[2].mxu1 }
 0x1ba   :  { %v180_v19 = vadd.f32 %v420_v18, %v381_v13  ;;  %v171_v20 = vpop.f32.mrb[3].mxu1  ;;  %v185_v22 = vmax.f32 %v177_v15, 0.0 }
 0x1bb   :  { %v172_v21 = vadd.f32 %v381_v13, %v171_v20  ;;  %v183_v24 = vmax.f32 %v169_v17, 0.0 }
 0x1bc   :  { %v186_v23 = vmax.f32 %v180_v19, 0.0 }
 0x1bd   :  { %v184_v25 = vmax.f32 %v172_v21, 0.0 }
 0x1be   :  { %v188_v26 = vpack.c.bf16 %v186_v23, %v185_v22 }
 0x1bf   :  { %v187_v27 = vpack.c.bf16 %v184_v25, %v183_v24 }
 0x1c1   :  { %425 = vmatprep.mubr.msk.bf16.mxu1 %vm54_vm0, %v187_v27 }
 0x1c2   :  { %426 = vmatmul.mubr.msk.bf16.vlgmr.msra.gmra.mrb[4].mxu1 %vm54_vm0, %v188_v26 }
 0x295   :  { %v427_v28 = vpop.f32.mrb[4].mxu1 }
 0x296   :  { %v245_v29 = vpop.f32.mrb[5].mxu1 }
 0x297   :  { %v428_v30 = vpop.f32.mrb[6].mxu1 }
 0x298   :  { %v261_v31 = vpack.c.bf16 %v428_v30, %v427_v28  ;;  %v248_v32 = vpop.f32.mrb[7].mxu1 }
 0x299   :  { %v260_v33 = vpack.c.bf16 %v248_v32, %v245_v29 }
 0x29b   :  { %429 = vmatprep.subr.bf16.mxu0 %v260_v33 }
 0x29c   :  { %430 = vmatpush3.bf16.msra.mxu0 %v260_v33 }
 0x29d   :  { %431 = vmatprep.subr.bf16.mxu0 %v261_v31 }
 0x2a0   :  { %432 = vmatpush3.bf16.msra.mxu0 %v261_v31 }
 0x2a3   :  { %434 = vmatmul.mubr.msk.bf16.vlgmr.msra.gmra.mrb[4].mxu0 %vm54_vm0, %v440_v3 }
 0x376   :  { %v435_v35 = vpop.f32.mrb[4].mxu0 }
 0x377   :  { %v312_v36 = vadd.f32 %v435_v35, %v389_v34  ;;  %v303_v37 = vpop.f32.mrb[5].mxu0 }
 0x378   :  { %v304_v38 = vadd.f32 %v389_v34, %v303_v37  ;;  %v436_v39 = vpop.f32.mrb[6].mxu0 }
 0x379   :  { %v315_v40 = vadd.f32 %v436_v39, %v389_v34  ;;  %v306_v41 = vpop.f32.mrb[7].mxu0  ;;  %v325_v42 = vsel %vm318_vm2, %v312_v36, -inf }
 0x37a   :  { %v307_v43 = vadd.f32 %v389_v34, %v306_v41  ;;  %326 = vmax.xlane.f32.xlu1 %v325_v42  ;;  %v319_v44 = vsel %vm318_vm2, %v304_v38, -inf }
 0x37b   :  { %320 = vmax.xlane.f32.xlu0 %v319_v44  ;;  %v328_v45 = vsel %vm318_vm2, %v315_v40, -inf }
 0x37c   :  { %v322_v46 = vsel %vm318_vm2, %v307_v43, -inf }
 0x37e   :  { %329 = vmax.xlane.f32.xlu1 %v328_v45 }
 0x37f   :  { %323 = vmax.xlane.f32.xlu0 %v322_v46 }
 0x407   :  { %v327_v47 = vpop.xlane.xlu1 %326 }
 0x408   :  { %v333_v48 = vsub.f32 %v312_v36, %v327_v47  ;;  %v321_v49 = vpop.xlane.xlu0 %320 }
 0x409   :  { %v331_v50 = vsub.f32 %v304_v38, %v321_v49 }
 0x40a   :  { %v339_v51 = vmul.f32 1.442695, %v333_v48 }
 0x40b   :  { %v335_v52 = vmul.f32 1.442695, %v331_v50  ;;  %v330_v53 = vpop.xlane.xlu1 %329 }
 0x40c   :  { %v334_v54 = vsub.f32 %v315_v40, %v330_v53  ;;  %v324_v55 = vpop.xlane.xlu0 %323 }
 0x40d   :  { %444 = vpow2.f32 %v335_v52  ;;  %v332_v56 = vsub.f32 %v307_v43, %v324_v55 }
 0x40e   :  { %446 = vpow2.f32 %v339_v51  ;;  %v341_v57 = vmul.f32 1.442695, %v334_v54 }
 0x40f   :  { %v337_v58 = vmul.f32 1.442695, %v332_v56 }
 0x411   :  { %448 = vpow2.f32 %v337_v58 }
 0x412   :  { %450 = vpow2.f32 %v341_v57 }
 0x417   :  { %v445_v59 = vpop.eup %444 }
 0x418   :  { %v343_v60 = vsel %vm318_vm2, %v445_v59, 0.0  ;;  %v447_v61 = vpop.eup %446 }
 0x419   :  { %344 = vadd.xlane.f32.xlu0 %v343_v60  ;;  %v349_v63 = vsel %vm318_vm2, %v447_v61, 0.0 }
 0x41b   :  { %v449_v62 = vpop.eup %448 }
 0x41c   :  { %v346_v0 = vsel %vm318_vm2, %v449_v62, 0.0  ;;  %v451_v1 = vpop.eup %450 }
 0x41d   :  { %350 = vadd.xlane.f32.xlu0 %v349_v63  ;;  %347 = vadd.xlane.f32.xlu1 %v346_v0  ;;  %v352_v2 = vsel %vm318_vm2, %v451_v1, 0.0 }
 0x421   :  { %353 = vadd.xlane.f32.xlu1 %v352_v2 }
 0x4a6   :  { %v345_v3 = vpop.xlane.xlu0 %344 }
 0x4a7   :  { %452 = vlog2.f32 %v345_v3 }
 0x4aa   :  { %v348_v4 = vpop.xlane.xlu1 %347  ;;  %v351_v5 = vpop.xlane.xlu0 %350 }
 0x4ab   :  { %454 = vlog2.f32 %v348_v4 }
 0x4ac   :  { %456 = vlog2.f32 %v351_v5 }
 0x4ae   :  { %v354_v6 = vpop.xlane.xlu1 %353 }
 0x4af   :  { %458 = vlog2.f32 %v354_v6 }
 0x4b1   :  { %v453_v7 = vpop.eup %452 }
 0x4b2   :  { %v356_v8 = vmul.f32 0.6931472, %v453_v7 }
 0x4b4   :  { %v363_v9 = vsub.f32 %v331_v50, %v356_v8 }
 0x4b5   :  { %v455_v10 = vpop.eup %454 }
 0x4b6   :  { %v457_v11 = vpop.eup %456  ;;  %367 = vst.msk [vmem:[%s558_s6] sm:$0xff] %vm318_vm2, %v363_v9  ;;  %v358_v12 = vmul.f32 0.6931472, %v455_v10 }
 0x4b7   :  { %v360_v13 = vmul.f32 0.6931472, %v457_v11 }
 0x4b8   :  { %v364_v14 = vsub.f32 %v332_v56, %v358_v12 }
 0x4b9   :  { %v459_v15 = vpop.eup %458  ;;  %v365_v16 = vsub.f32 %v333_v48, %v360_v13 }
 0x4ba   :  { %368 = vst.msk [vmem:[%s558_s6 + $0x8] sm:$0xff] %vm318_vm2, %v364_v14  ;;  %v362_v17 = vmul.f32 0.6931472, %v459_v15 }
 0x4bb   :  { %369 = vst.msk [vmem:[%s558_s6 + $0x10] sm:$0xff] %vm318_vm2, %v365_v16 }
 0x4bc   :  { %v366_v18 = vsub.f32 %v334_v54, %v362_v17 }
 0x4be   :  { %370 = vst.msk [vmem:[%s558_s6 + $0x18] sm:$0xff] %vm318_vm2, %v366_v18 }

</bundles_post_ra>
